<compile_context>
chip_gen: v7x
topology: tpu7x:2x2x1
jax: 0.10.0
libtpu: 0.0.40
codegen_flags: <defaults>
</compile_context>

<pallas_src>
import jax
import jax.numpy as jnp
from jax.experimental import pallas as pl
from jax.experimental.pallas import tpu as pltpu

LATENT_DIM = 20
HIDDEN_DIM = 200
HIDDEN_DIM_PAD = 256                   # 2 * 128, lane-dense hidden activations
OUTPUT_DIM = 784                       # e.g. 28*28 MNIST pixels
DEFAULT_TM = 512                       # batch rows per grid step


def _round_up(x, m):
    return ((x + m - 1) // m) * m


def _decoder_kernel(z_ref, w1_ref, b1_ref, w2_ref, b2_ref, out_ref):
    # linear1 + ReLU: bf16 MXU operands, f32 accumulation, f32 epilogue (VPU).
    h = jnp.dot(z_ref[...], w1_ref[...], preferred_element_type=jnp.float32)
    h = jnp.maximum(h + b1_ref[...], 0.0)           # (TM, 256) f32

    # linear2: cast activation to bf16 for the MXU, keep f32 accumulation.
    o = jnp.dot(h.astype(w2_ref.dtype), w2_ref[...],
                preferred_element_type=jnp.float32)
    o = o + b2_ref[...]                             # (TM, 784) f32

    # sigmoid(o) = 1 / (1 + exp(-o)): exp on the EUP, approx reciprocal also on
    # the EUP slot (avoids a full-precision VALU divide). f32 throughout.
    sig = pl.reciprocal(1.0 + jnp.exp(-o), approx=True)
    out_ref[...] = sig.astype(out_ref.dtype)


def prepare_decoder_params(w1_t, b1, w2_t, b2):
    """One-time parameter prep (call at init, not per forward).

    w1_t: (latent, hidden), b1: (hidden,), w2_t: (hidden, output), b2: (output,)
    Pads the hidden dim 200 -> 256 with zeros (mathematically exact since
    ReLU(0) = 0 and the corresponding W2 rows are zero) and casts MXU operands
    to bfloat16; biases stay f32 as (1, D) rows for broadcast.
    """
    pad_h = HIDDEN_DIM_PAD - HIDDEN_DIM
    w1_p = jnp.pad(w1_t, ((0, 0), (0, pad_h))).astype(jnp.bfloat16)      # (20, 256)
    b1_row = jnp.pad(b1, (0, pad_h)).reshape(1, -1).astype(jnp.float32)  # (1, 256)
    w2_p = jnp.pad(w2_t, ((0, pad_h), (0, 0))).astype(jnp.bfloat16)      # (256, 784)
    b2_row = b2.reshape(1, -1).astype(jnp.float32)                       # (1, 784)
    return w1_p, b1_row, w2_p, b2_row


def decoder_forward(z, prepared_params, *, tm=DEFAULT_TM, out_dtype=jnp.float32):
    """z: (N, latent) -> x_hat: (N, 784) in `out_dtype` (default float32)."""
    w1_p, b1_row, w2_p, b2_row = prepared_params
    n, latent = z.shape
    hidden = w1_p.shape[1]
    out_dim = w2_p.shape[1]

    # Keep small batches small; multiple of 16 so bf16 z tiles pack cleanly.
    tm = max(16, min(tm, _round_up(n, 16)))
    grid = (pl.cdiv(n, tm),)

    z_bf16 = z.astype(jnp.bfloat16)

    bytes_out = jnp.dtype(out_dtype).itemsize
    cost = pl.CostEstimate(
        flops=2 * n * (latent * hidden + hidden * out_dim),
        transcendentals=n * out_dim,
        bytes_accessed=(n * latent * 2 + n * out_dim * bytes_out
                        + (w1_p.size + w2_p.size) * 2
                        + (b1_row.size + b2_row.size) * 4),
    )

    return pl.pallas_call(
        _decoder_kernel,
        out_shape=jax.ShapeDtypeStruct((n, out_dim), out_dtype),
        grid=grid,
        in_specs=[
            # z tile marches over the batch; weights/biases stay VMEM-resident
            # (constant block index -> no re-fetch across grid steps).
            pl.BlockSpec((tm, latent), lambda i: (i, 0)),
            pl.BlockSpec((latent, hidden), lambda i: (0, 0)),
            pl.BlockSpec((1, hidden), lambda i: (0, 0)),
            pl.BlockSpec((hidden, out_dim), lambda i: (0, 0)),
            pl.BlockSpec((1, out_dim), lambda i: (0, 0)),
        ],
        out_specs=pl.BlockSpec((tm, out_dim), lambda i: (i, 0)),
        compiler_params=pltpu.CompilerParams(
            dimension_semantics=("parallel",),
            vmem_limit_bytes=32 << 20,
        ),
        cost_estimate=cost,
    )(z_bf16, w1_p, b1_row, w2_p, b2_row)


def init_params(key):
    """Deterministic init mimicking nn.Linear's uniform(-1/sqrt(fan_in), ...)."""
    k1, k2, k3, k4 = jax.random.split(key, 4)
    bound1 = 1.0 / jnp.sqrt(LATENT_DIM)
    bound2 = 1.0 / jnp.sqrt(HIDDEN_DIM)
    # Stored directly in (in, out) layout (transposed vs. PyTorch (out, in)).
    w1_t = jax.random.uniform(k1, (LATENT_DIM, HIDDEN_DIM), jnp.float32, -bound1, bound1)
    b1 = jax.random.uniform(k2, (HIDDEN_DIM,), jnp.float32, -bound1, bound1)
    w2_t = jax.random.uniform(k3, (HIDDEN_DIM, OUTPUT_DIM), jnp.float32, -bound2, bound2)
    b2 = jax.random.uniform(k4, (OUTPUT_DIM,), jnp.float32, -bound2, bound2)
    return w1_t, b1, w2_t, b2


def reference_forward_f32(z, w1_t, b1, w2_t, b2):
    h = jnp.maximum(z @ w1_t + b1, 0.0)
    return jax.nn.sigmoid(h @ w2_t + b2)


def reference_forward_bf16(z, w1_t, b1, w2_t, b2):
    """Matches the kernel's precision path (bf16 MXU operands, f32 accum)."""
    h = jnp.dot(z.astype(jnp.bfloat16), w1_t.astype(jnp.bfloat16),
                preferred_element_type=jnp.float32) + b1
    h = jnp.maximum(h, 0.0)
    o = jnp.dot(h.astype(jnp.bfloat16), w2_t.astype(jnp.bfloat16),
                preferred_element_type=jnp.float32) + b2
    return jax.nn.sigmoid(o)


if __name__ == "__main__":
    key = jax.random.PRNGKey(0)
    kp, kz, kz2 = jax.random.split(key, 3)
    w1_t, b1, w2_t, b2 = init_params(kp)
    prepared = prepare_decoder_params(w1_t, b1, w2_t, b2)

    # Small batch.
    N = 8
    z = jax.random.normal(kz, (N, LATENT_DIM), jnp.float32)
    x_hat = jax.block_until_ready(decoder_forward(z, prepared))
    assert x_hat.shape == (N, OUTPUT_DIM)
    assert x_hat.dtype == jnp.float32

    # Matching-precision reference (tight tolerance; covers approx reciprocal).
    x_ref_bf16 = reference_forward_bf16(z, w1_t, b1, w2_t, b2)
    assert jnp.allclose(x_hat, x_ref_bf16, atol=5e-3, rtol=5e-3)

    # Full-f32 reference (looser tolerance covers bf16 rounding; output in [0,1]).
    x_ref_f32 = reference_forward_f32(z, w1_t, b1, w2_t, b2)
    assert jnp.allclose(x_hat, x_ref_f32, atol=2e-2, rtol=2e-2)

    # Ragged batch with multiple grid tiles: exercises Pallas edge-block
    # clipping (N=37, tm=16 -> grid=3 with a partial last tile), no wrapper
    # padding or post-kernel slicing involved.
    N2 = 37
    z2 = jax.random.normal(kz2, (N2, LATENT_DIM), jnp.float32)
    x_hat2 = jax.block_until_ready(decoder_forward(z2, prepared, tm=16))
    assert x_hat2.shape == (N2, OUTPUT_DIM)
    x_ref2 = reference_forward_f32(z2, w1_t, b1, w2_t, b2)
    assert jnp.allclose(x_hat2, x_ref2, atol=2e-2, rtol=2e-2)

    print("KERNEL_OK")
</pallas_src>

<mosaic_0001>
module attributes {stable_mosaic.version = 11 : i64} {
  func.func @_decoder_kernel(%arg0: i32, %arg1: memref<16x20xbf16, #tpu.memory_space<vmem>>, %arg2: memref<20x256xbf16, #tpu.memory_space<vmem>>, %arg3: memref<1x256xf32, #tpu.memory_space<vmem>>, %arg4: memref<256x784xbf16, #tpu.memory_space<vmem>>, %arg5: memref<1x784xf32, #tpu.memory_space<vmem>>, %arg6: memref<16x784xf32, #tpu.memory_space<vmem>>) attributes {dimension_semantics = [#tpu.dimension_semantics<parallel>], iteration_bounds = array<i64: 1>, scalar_prefetch = 0 : i64, scratch_operands = 0 : i64, tpu.core_type = #tpu.core_type<tc>, window_params = [{transform_indices = @transform_0, window_bounds = array<i64: 16, 20>}, {pipeline_mode = #tpu.pipeline_mode<synchronous>, transform_indices = @transform_1, window_bounds = array<i64: 20, 256>}, {pipeline_mode = #tpu.pipeline_mode<synchronous>, transform_indices = @transform_2, window_bounds = array<i64: 1, 256>}, {pipeline_mode = #tpu.pipeline_mode<synchronous>, transform_indices = @transform_3, window_bounds = array<i64: 256, 784>}, {pipeline_mode = #tpu.pipeline_mode<synchronous>, transform_indices = @transform_4, window_bounds = array<i64: 1, 784>}, {transform_indices = @transform_5, window_bounds = array<i64: 16, 784>}]} {
    %c0 = arith.constant 0 : index
    %c0_0 = arith.constant 0 : index
    %0 = vector.load %arg1[%c0, %c0_0] : memref<16x20xbf16, #tpu.memory_space<vmem>>, vector<16x20xbf16>
    %c0_1 = arith.constant 0 : index
    %c0_2 = arith.constant 0 : index
    %1 = vector.load %arg2[%c0_1, %c0_2] : memref<20x256xbf16, #tpu.memory_space<vmem>>, vector<20x256xbf16>
    %cst = arith.constant dense<0.000000e+00> : vector<16x256xf32>
    %2 = tpu.matmul %0, %1, %cst {dimension_numbers = #tpu.dot_dimension_numbers<[1], [0], [0], [1], [0, 0, 1, 1], [], []>} : vector<16x20xbf16>, vector<20x256xbf16>, vector<16x256xf32> -> vector<16x256xf32>
    %c0_3 = arith.constant 0 : index
    %c0_4 = arith.constant 0 : index
    %3 = vector.load %arg3[%c0_3, %c0_4] : memref<1x256xf32, #tpu.memory_space<vmem>>, vector<1x256xf32>
    %4 = vector.broadcast %3 : vector<1x256xf32> to vector<16x256xf32>
    %5 = arith.addf %2, %4 : vector<16x256xf32>
    %cst_5 = arith.constant 0.000000e+00 : f32
    %6 = vector.broadcast %cst_5 : f32 to vector<16x256xf32>
    %7 = arith.maximumf %5, %6 : vector<16x256xf32>
    %8 = arith.truncf %7 : vector<16x256xf32> to vector<16x256xbf16>
    %c0_6 = arith.constant 0 : index
    %c0_7 = arith.constant 0 : index
    %9 = vector.load %arg4[%c0_6, %c0_7] : memref<256x784xbf16, #tpu.memory_space<vmem>>, vector<256x784xbf16>
    %cst_8 = arith.constant dense<0.000000e+00> : vector<16x784xf32>
    %10 = tpu.matmul %8, %9, %cst_8 {dimension_numbers = #tpu.dot_dimension_numbers<[1], [0], [0], [1], [0, 0, 1, 1], [], []>} : vector<16x256xbf16>, vector<256x784xbf16>, vector<16x784xf32> -> vector<16x784xf32>
    %c0_9 = arith.constant 0 : index
    %c0_10 = arith.constant 0 : index
    %11 = vector.load %arg5[%c0_9, %c0_10] : memref<1x784xf32, #tpu.memory_space<vmem>>, vector<1x784xf32>
    %12 = vector.broadcast %11 : vector<1x784xf32> to vector<16x784xf32>
    %13 = arith.addf %10, %12 : vector<16x784xf32>
    %cst_11 = arith.constant 0.000000e+00 : f32
    %14 = vector.broadcast %cst_11 : f32 to vector<16x784xf32>
    %15 = arith.subf %14, %13 : vector<16x784xf32>
    %16 = math.exp %15 : vector<16x784xf32>
    %cst_12 = arith.constant 1.000000e+00 : f32
    %17 = vector.broadcast %cst_12 : f32 to vector<16x784xf32>
    %18 = arith.addf %17, %16 : vector<16x784xf32>
    %19 = tpu.reciprocal %18 {approx = true} : vector<16x784xf32> -> vector<16x784xf32>
    %c0_13 = arith.constant 0 : index
    %c0_14 = arith.constant 0 : index
    %20 = vector.load %arg6[%c0_13, %c0_14] : memref<16x784xf32, #tpu.memory_space<vmem>>, vector<16x784xf32>
    tpu.vector_store %arg6[%c0_13, %c0_14], %19 {strides = array<i32>} : memref<16x784xf32, #tpu.memory_space<vmem>>, vector<16x784xf32>,
    return
  }
  func.func @transform_0(%arg0: i32) -> (i32, i32) {
    %c0_i32 = arith.constant 0 : i32
    %c0_i32_0 = arith.constant 0 : i32
    return %arg0, %c0_i32 : i32, i32
  }
  func.func @transform_1(%arg0: i32) -> (i32, i32) {
    %c0_i32 = arith.constant 0 : i32
    %c0_i32_0 = arith.constant 0 : i32
    %c0_i32_1 = arith.constant 0 : i32
    return %c0_i32, %c0_i32_0 : i32, i32
  }
  func.func @transform_2(%arg0: i32) -> (i32, i32) {
    %c0_i32 = arith.constant 0 : i32
    %c0_i32_0 = arith.constant 0 : i32
    %c0_i32_1 = arith.constant 0 : i32
    return %c0_i32, %c0_i32_0 : i32, i32
  }
  func.func @transform_3(%arg0: i32) -> (i32, i32) {
    %c0_i32 = arith.constant 0 : i32
    %c0_i32_0 = arith.constant 0 : i32
    %c0_i32_1 = arith.constant 0 : i32
    return %c0_i32, %c0_i32_0 : i32, i32
  }
  func.func @transform_4(%arg0: i32) -> (i32, i32) {
    %c0_i32 = arith.constant 0 : i32
    %c0_i32_0 = arith.constant 0 : i32
    %c0_i32_1 = arith.constant 0 : i32
    return %c0_i32, %c0_i32_0 : i32, i32
  }
  func.func @transform_5(%arg0: i32) -> (i32, i32) {
    %c0_i32 = arith.constant 0 : i32
    %c0_i32_0 = arith.constant 0 : i32
    return %arg0, %c0_i32 : i32, i32
  }
}

</mosaic_0001>

<bundles_post_ra>
// kernel: tpu_custom_call.1
= control target key start
LH: loop header
LB: loop body
LE: loop exit
PB: predicated region body
PF: predicated region fallthrough
CT: control target
= control target key end

     0   :  { %10 = vsyncpa [#allocation3], 0  ;;  %v1522_v3 = vmov 0   ;;  %vm63_vm0 = vcmask 1041408   ;;  %vm59_vm1 = vcmask 162816   ;;  %vm1106_vm2 = vcmask 130048   ;;  %s1954_s0 = inlined_call_operand.vmem [shape: bf16[8,20], index: 0, kind: input, shape index: {}]   ;;  %s1955_s1 = inlined_call_operand.vmem [shape: bf16[20,256], index: 1, kind: input, shape index: {}]   ;;  %s1956_s2 = inlined_call_operand.vmem [shape: f32[1,256], index: 2, kind: input, shape index: {}]   ;;  %s1957_s3 = inlined_call_operand.vmem [shape: bf16[256,784], index: 3, kind: input, shape index: {}]   ;;  %s1958_s4 = inlined_call_operand.vmem [shape: f32[1,784], index: 4, kind: input, shape index: {}]   ;;  %s1959_s5 = inlined_call_operand.hbm [shape: f32[8,784], index: 5, kind: output, shape index: {}]  }
   0x1   :  { %v1276_v0 = vld [vmem:[%s1955_s1 + $0x4] ss:$8 sps:$4 sm:$0xff]   ;;  %v1278_v1 = vld [vmem:[%s1955_s1] ss:$8 sps:$4 sm:$0xff]   ;;  %v26_v2 = vld [vmem:[%s1955_s1 + $0x10] sm:$0x33]  ;;  %102 = vmatprep.mubr.bf16.mxu0 %v1522_v3 }
   0x2   :  { %v1135_v4 = vcombine.high %v26_v2, %v26_v2  ;;  %v1134_v5 = vcombine.low %v26_v2, %v26_v2  ;;  %70 = vmatprep.subr.bf16.mxu0 %v1276_v0  ;;  %v1282_v6 = vld [vmem:[%s1957_s3 + $0x4] ss:$28 sps:$4 sm:$0xff]   ;;  %v1286_v9 = vld [vmem:[%s1957_s3 + $0xc] ss:$28 sps:$4 sm:$0xff]   ;;  %v1288_v11 = vld [vmem:[%s1957_s3 + $0x3c] ss:$28 sps:$4 sm:$0xff]  }
   0x3   :  { %71 = vmatpush1.bf16.msra.mxu0 %v1278_v1  ;;  %v1281_v8 = vld [vmem:[%s1954_s0] sm:$0xff]   ;;  %860 = vmatprep.subr.bf16.mxu1 %v1282_v6  ;;  %v1293_v14 = vld [vmem:[%s1957_s3 + $0x38] ss:$28 sps:$4 sm:$0xff]   ;;  %v1299_v17 = vld [vmem:[%s1957_s3 + $0x70] ss:$28 sps:$4 sm:$0xff]  }
   0x4   :  { %1136 = vmatprep.subr.msk.bf16.mxu0 %vm63_vm0, %v1135_v4  ;;  %v65_v7 = vsel %vm63_vm0, %v1134_v5, 0  ;;  %v1287_v10 = vld [vmem:[%s1957_s3] ss:$28 sps:$4 sm:$0xff]   ;;  %v1284_v12 = vld [vmem:[%s1957_s3 + $0x8] ss:$28 sps:$4 sm:$0xff]  }
   0x5   :  { %861 = vmatpush1.bf16.msra.mxu1 %v1287_v10  ;;  %v1292_v13 = vld [vmem:[%s1957_s3 + $0x44] ss:$28 sps:$4 sm:$0xff]   ;;  %v1294_v15 = vld [vmem:[%s1957_s3 + $0x74] ss:$28 sps:$4 sm:$0xff]   ;;  %v1300_v18 = vld [vmem:[%s1957_s3 + $0xac] ss:$28 sps:$4 sm:$0xff]   ;;  %v29_v10 = vlaneseq }
   0x6   :  { %862 = vmatprep.subr.bf16.mxu1 %v1288_v11  ;;  %v1290_v16 = vld [vmem:[%s1957_s3 + $0x40] ss:$28 sps:$4 sm:$0xff]   ;;  %v1296_v20 = vld [vmem:[%s1957_s3 + $0x78] ss:$28 sps:$4 sm:$0xff]   ;;  %v1305_v21 = vld [vmem:[%s1957_s3 + $0xa8] ss:$28 sps:$4 sm:$0xff]  }
   0x7   :  { %73 = vmatpush1.bf16.msra.mxu0 %v65_v7  ;;  %v1298_v19 = vld [vmem:[%s1957_s3 + $0x7c] ss:$28 sps:$4 sm:$0xff]   ;;  %v1306_v22 = vld [vmem:[%s1957_s3 + $0xe4] ss:$28 sps:$4 sm:$0xff]   ;;  %v1304_v23 = vld [vmem:[%s1957_s3 + $0xb4] ss:$28 sps:$4 sm:$0xff]  }
   0x8   :  { %903 = vmatprep.subr.bf16.mxu0 %v1286_v9  ;;  %v1302_v24 = vld [vmem:[%s1957_s3 + $0xb0] ss:$28 sps:$4 sm:$0xff]   ;;  %v1311_v25 = vld [vmem:[%s1957_s3 + $0xe0] ss:$28 sps:$4 sm:$0xff]   ;;  %v1308_v28 = vld [vmem:[%s1957_s3 + $0xe8] ss:$28 sps:$4 sm:$0xff]  }
   0x9   :  { %863 = vmatpush1.bf16.msra.mxu1 %v1293_v14  ;;  %v1312_v26 = vld [vmem:[%s1957_s3 + $0x11c] ss:$28 sps:$4 sm:$0xff]   ;;  %v1310_v27 = vld [vmem:[%s1957_s3 + $0xec] ss:$28 sps:$4 sm:$0xff]   ;;  %v1318_v30 = vld [vmem:[%s1957_s3 + $0x154] ss:$28 sps:$4 sm:$0xff]  }
   0xa   :  { %1137 = vmatmul.mubr.msk.bf16.vlgmr.msra.gmra.mrb[0].mxu0 %vm59_vm1, %v1281_v8  ;;  %864 = vmatprep.subr.bf16.mxu1 %v1294_v15  ;;  %v1317_v29 = vld [vmem:[%s1957_s3 + $0x118] ss:$28 sps:$4 sm:$0xff]   ;;  %v1316_v31 = vld [vmem:[%s1957_s3 + $0x124] ss:$28 sps:$4 sm:$0xff]   ;;  %v1323_v33 = vld [vmem:[%s1957_s3 + $0x150] ss:$28 sps:$4 sm:$0xff]  }
   0xb   :  { %904 = vmatpush1.bf16.msra.mxu0 %v1284_v12  ;;  %v1314_v32 = vld [vmem:[%s1957_s3 + $0x120] ss:$28 sps:$4 sm:$0xff]   ;;  %v1324_v34 = vld [vmem:[%s1957_s3 + $0x18c] ss:$28 sps:$4 sm:$0xff]   ;;  %v1320_v36 = vld [vmem:[%s1957_s3 + $0x158] ss:$28 sps:$4 sm:$0xff]  }
   0xc   :  { %905 = vmatprep.subr.bf16.mxu0 %v1292_v13  ;;  %v1322_v35 = vld [vmem:[%s1957_s3 + $0x15c] ss:$28 sps:$4 sm:$0xff]   ;;  %v1329_v37 = vld [vmem:[%s1957_s3 + $0x188] ss:$28 sps:$4 sm:$0xff]   ;;  %v1328_v39 = vld [vmem:[%s1957_s3 + $0x194] ss:$28 sps:$4 sm:$0xff]  }
   0xd   :  { %865 = vmatpush1.bf16.msra.mxu1 %v1299_v17  ;;  %v1330_v38 = vld [vmem:[%s1957_s3 + $0x1c4] ss:$28 sps:$4 sm:$0xff]   ;;  %v1326_v40 = vld [vmem:[%s1957_s3 + $0x190] ss:$28 sps:$4 sm:$0xff]   ;;  %v1336_v42 = vld [vmem:[%s1957_s3 + $0x1fc] ss:$28 sps:$4 sm:$0xff]  }
   0xe   :  { %866 = vmatprep.subr.bf16.mxu1 %v1300_v18  ;;  %v1335_v41 = vld [vmem:[%s1957_s3 + $0x1c0] ss:$28 sps:$4 sm:$0xff]   ;;  %v1334_v43 = vld [vmem:[%s1957_s3 + $0x1cc] ss:$28 sps:$4 sm:$0xff]   ;;  %v1341_v45 = vld [vmem:[%s1957_s3 + $0x1f8] ss:$28 sps:$4 sm:$0xff]  }
   0xf   :  { %906 = vmatpush1.bf16.msra.mxu0 %v1290_v16  ;;  %v1332_v44 = vld [vmem:[%s1957_s3 + $0x1c8] ss:$28 sps:$4 sm:$0xff]   ;;  %v1342_v47 = vld [vmem:[%s1957_s3 + $0x234] ss:$28 sps:$4 sm:$0xff]   ;;  %v1338_v49 = vld [vmem:[%s1957_s3 + $0x200] ss:$28 sps:$4 sm:$0xff]  }
  0x10   :  { %907 = vmatprep.subr.bf16.mxu0 %v1298_v19  ;;  %v1340_v46 = vld [vmem:[%s1957_s3 + $0x204] ss:$28 sps:$4 sm:$0xff]   ;;  %v1347_v48 = vld [vmem:[%s1957_s3 + $0x230] ss:$28 sps:$4 sm:$0xff]   ;;  %v1346_v51 = vld [vmem:[%s1957_s3 + $0x23c] ss:$28 sps:$4 sm:$0xff]  }
  0x11   :  { %867 = vmatpush1.bf16.msra.mxu1 %v1305_v21  ;;  %v1348_v50 = vld [vmem:[%s1957_s3 + $0x26c] ss:$28 sps:$4 sm:$0xff]   ;;  %v1344_v53 = vld [vmem:[%s1957_s3 + $0x238] ss:$28 sps:$4 sm:$0xff]   ;;  %v1354_v54 = vld [vmem:[%s1957_s3 + $0x2a4] ss:$28 sps:$4 sm:$0xff]  }
  0x12   :  { %868 = vmatprep.subr.bf16.mxu1 %v1306_v22  ;;  %v1353_v52 = vld [vmem:[%s1957_s3 + $0x268] ss:$28 sps:$4 sm:$0xff]   ;;  %v1352_v55 = vld [vmem:[%s1957_s3 + $0x274] ss:$28 sps:$4 sm:$0xff]   ;;  %v1359_v56 = vld [vmem:[%s1957_s3 + $0x2a0] ss:$28 sps:$4 sm:$0xff]  }
  0x13   :  { %908 = vmatpush1.bf16.msra.mxu0 %v1296_v20  ;;  %v1350_v57 = vld [vmem:[%s1957_s3 + $0x270] ss:$28 sps:$4 sm:$0xff]   ;;  %v1360_v58 = vld [vmem:[%s1957_s3 + $0x2dc] ss:$28 sps:$4 sm:$0xff]   ;;  %v1356_v61 = vld [vmem:[%s1957_s3 + $0x2a8] ss:$28 sps:$4 sm:$0xff]  }
  0x14   :  { %909 = vmatprep.subr.bf16.mxu0 %v1304_v23  ;;  %v1358_v59 = vld [vmem:[%s1957_s3 + $0x2ac] ss:$28 sps:$4 sm:$0xff]   ;;  %v1365_v60 = vld [vmem:[%s1957_s3 + $0x2d8] ss:$28 sps:$4 sm:$0xff]   ;;  %v1364_v62 = vld [vmem:[%s1957_s3 + $0x2e4] ss:$28 sps:$4 sm:$0xff]  }
  0x15   :  { %869 = vmatpush1.bf16.msra.mxu1 %v1311_v25  ;;  %v1362_v63 = vld [vmem:[%s1957_s3 + $0x2e0] ss:$28 sps:$4 sm:$0xff]   ;;  %v1366_v0 = vld [vmem:[%s1957_s3 + $0x314] ss:$28 sps:$4 sm:$0xff]   ;;  %v1372_v4 = vld [vmem:[%s1957_s3 + $0x34c] ss:$28 sps:$4 sm:$0xff]  }
  0x16   :  { %870 = vmatprep.subr.bf16.mxu1 %v1312_v26  ;;  %v1370_v1 = vld [vmem:[%s1957_s3 + $0x31c] ss:$28 sps:$4 sm:$0xff]   ;;  %v1371_v3 = vld [vmem:[%s1957_s3 + $0x310] ss:$28 sps:$4 sm:$0xff]   ;;  %v1377_v7 = vld [vmem:[%s1957_s3 + $0x348] ss:$28 sps:$4 sm:$0xff]  }
  0x17   :  { %910 = vmatpush1.bf16.msra.mxu0 %v1302_v24  ;;  %v1368_v2 = vld [vmem:[%s1957_s3 + $0x318] ss:$28 sps:$4 sm:$0xff]   ;;  %v1374_v6 = vld [vmem:[%s1957_s3 + $0x350] ss:$28 sps:$4 sm:$0xff]   ;;  %v1766_v11 = vshrl.u32 %v29_v10, 7 }
  0x18   :  { %911 = vmatprep.subr.bf16.mxu0 %v1310_v27  ;;  %v1376_v5 = vld [vmem:[%s1957_s3 + $0x354] ss:$28 sps:$4 sm:$0xff]   ;;  %v27_v13 = vld [vmem:[%s1956_s2] sm:$0x3] }
  0x19   :  { %871 = vmatpush1.bf16.msra.mxu1 %v1317_v29  ;;  %v1380_v8 = vld [vmem:[%s1957_s3 + $0x14] ss:$28 sps:$4 sm:$0xff]   ;;  %v31_v12 = vsub.s32 0, %v1766_v11  ;;  %v35_v14 = vsub.s32 1, %v1766_v11  ;;  %v1436_v10 = vld [vmem:[%s1957_s3 + $0x320] ss:$28 sps:$4 sm:$0xff]  }
  0x1a   :  { %872 = vmatprep.subr.bf16.mxu1 %v1318_v30  ;;  %v1381_v9 = vld [vmem:[%s1957_s3 + $0x1d8] ss:$28 sps:$4 sm:$0xff]  }
  0x1b   :  { %912 = vmatpush1.bf16.msra.mxu0 %v1308_v28  ;;  %v32_v15 = vrot.slane %v27_v13, %v31_v12  ;;  %v36_v16 = vrot.slane %v27_v13, %v35_v14  ;;  %v1441_v13 = vld [vmem:[%s1957_s3 + $0x35c] ss:$28 sps:$4 sm:$0xff]  }
  0x1c   :  { %913 = vmatprep.subr.bf16.mxu0 %v1316_v31  ;;  %v1378_v31 = vld [vmem:[%s1957_s3 + $0x10] ss:$28 sps:$4 sm:$0xff]  }
  0x1d   :  { %873 = vmatpush1.bf16.msra.mxu1 %v1323_v33  ;;  %v1385_v33 = vld [vmem:[%s1957_s3 + $0x4c] ss:$28 sps:$4 sm:$0xff]  }
  0x1e   :  { %874 = vmatprep.subr.bf16.mxu1 %v1324_v34  ;;  %v1386_v34 = vld [vmem:[%s1957_s3 + $0x210] ss:$28 sps:$4 sm:$0xff]  }
  0x1f   :  { %914 = vmatpush1.bf16.msra.mxu0 %v1314_v32  ;;  %v1382_v32 = vld [vmem:[%s1957_s3 + $0x18] ss:$28 sps:$4 sm:$0xff]  }
  0x20   :  { %915 = vmatprep.subr.bf16.mxu0 %v1322_v35  ;;  %v1383_v35 = vld [vmem:[%s1957_s3 + $0x48] ss:$28 sps:$4 sm:$0xff]  }
  0x21   :  { %875 = vmatpush1.bf16.msra.mxu1 %v1329_v37  ;;  %v1390_v37 = vld [vmem:[%s1957_s3 + $0x84] ss:$28 sps:$4 sm:$0xff]  }
  0x22   :  { %876 = vmatprep.subr.bf16.mxu1 %v1330_v38  ;;  %v1391_v38 = vld [vmem:[%s1957_s3 + $0x248] ss:$28 sps:$4 sm:$0xff]  }
  0x23   :  { %916 = vmatpush1.bf16.msra.mxu0 %v1320_v36  ;;  %v1387_v36 = vld [vmem:[%s1957_s3 + $0x50] ss:$28 sps:$4 sm:$0xff]  }
  0x24   :  { %917 = vmatprep.subr.bf16.mxu0 %v1328_v39  ;;  %v1388_v39 = vld [vmem:[%s1957_s3 + $0x80] ss:$28 sps:$4 sm:$0xff]  }
  0x25   :  { %877 = vmatpush1.bf16.msra.mxu1 %v1335_v41  ;;  %v1395_v41 = vld [vmem:[%s1957_s3 + $0xbc] ss:$28 sps:$4 sm:$0xff]  }
  0x26   :  { %878 = vmatprep.subr.bf16.mxu1 %v1336_v42  ;;  %v1396_v42 = vld [vmem:[%s1957_s3 + $0x280] ss:$28 sps:$4 sm:$0xff]  }
  0x27   :  { %918 = vmatpush1.bf16.msra.mxu0 %v1326_v40  ;;  %v1392_v40 = vld [vmem:[%s1957_s3 + $0x88] ss:$28 sps:$4 sm:$0xff]  }
  0x28   :  { %919 = vmatprep.subr.bf16.mxu0 %v1334_v43  ;;  %v1393_v43 = vld [vmem:[%s1957_s3 + $0xb8] ss:$28 sps:$4 sm:$0xff]  }
  0x29   :  { %879 = vmatpush1.bf16.msra.mxu1 %v1341_v45  ;;  %v1400_v45 = vld [vmem:[%s1957_s3 + $0xf4] ss:$28 sps:$4 sm:$0xff]  }
  0x2a   :  { %880 = vmatprep.subr.bf16.mxu1 %v1342_v47  ;;  %v1398_v47 = vld [vmem:[%s1957_s3 + $0xf0] ss:$28 sps:$4 sm:$0xff]  }
  0x2b   :  { %920 = vmatpush1.bf16.msra.mxu0 %v1332_v44  ;;  %v1397_v44 = vld [vmem:[%s1957_s3 + $0xc0] ss:$28 sps:$4 sm:$0xff]  }
  0x2c   :  { %921 = vmatprep.subr.bf16.mxu0 %v1340_v46  ;;  %v1401_v46 = vld [vmem:[%s1957_s3 + $0x2b8] ss:$28 sps:$4 sm:$0xff]  }
  0x2d   :  { %881 = vmatpush1.bf16.msra.mxu1 %v1347_v48  ;;  %v1402_v48 = vld [vmem:[%s1957_s3 + $0xf8] ss:$28 sps:$4 sm:$0xff]  }
  0x2e   :  { %882 = vmatprep.subr.bf16.mxu1 %v1348_v50  ;;  %v1406_v50 = vld [vmem:[%s1957_s3 + $0x2f0] ss:$28 sps:$4 sm:$0xff]  }
  0x2f   :  { %922 = vmatpush1.bf16.msra.mxu0 %v1338_v49  ;;  %v1405_v49 = vld [vmem:[%s1957_s3 + $0x12c] ss:$28 sps:$4 sm:$0xff]  }
  0x30   :  { %923 = vmatprep.subr.bf16.mxu0 %v1346_v51  ;;  %v1403_v51 = vld [vmem:[%s1957_s3 + $0x128] ss:$28 sps:$4 sm:$0xff]  }
  0x31   :  { %883 = vmatpush1.bf16.msra.mxu1 %v1353_v52  ;;  %v1407_v52 = vld [vmem:[%s1957_s3 + $0x130] ss:$28 sps:$4 sm:$0xff]  }
  0x32   :  { %884 = vmatprep.subr.bf16.mxu1 %v1354_v54  ;;  %v1411_v54 = vld [vmem:[%s1957_s3 + $0x328] ss:$28 sps:$4 sm:$0xff]  }
  0x33   :  { %924 = vmatpush1.bf16.msra.mxu0 %v1344_v53  ;;  %v1410_v53 = vld [vmem:[%s1957_s3 + $0x164] ss:$28 sps:$4 sm:$0xff]  }
  0x34   :  { %925 = vmatprep.subr.bf16.mxu0 %v1352_v55  ;;  %v1408_v55 = vld [vmem:[%s1957_s3 + $0x160] ss:$28 sps:$4 sm:$0xff]  }
  0x35   :  { %885 = vmatpush1.bf16.msra.mxu1 %v1359_v56  ;;  %v1412_v56 = vld [vmem:[%s1957_s3 + $0x168] ss:$28 sps:$4 sm:$0xff]  }
  0x36   :  { %886 = vmatprep.subr.bf16.mxu1 %v1360_v58  ;;  %v1416_v58 = vld [vmem:[%s1957_s3 + $0x360] ss:$28 sps:$4 sm:$0xff]  }
  0x37   :  { %926 = vmatpush1.bf16.msra.mxu0 %v1350_v57  ;;  %v1415_v57 = vld [vmem:[%s1957_s3 + $0x19c] ss:$28 sps:$4 sm:$0xff]  }
  0x38   :  { %927 = vmatprep.subr.bf16.mxu0 %v1358_v59  ;;  %v1413_v59 = vld [vmem:[%s1957_s3 + $0x198] ss:$28 sps:$4 sm:$0xff]  }
  0x39   :  { %887 = vmatpush1.bf16.msra.mxu1 %v1365_v60  ;;  %v1417_v60 = vld [vmem:[%s1957_s3 + $0x1a0] ss:$28 sps:$4 sm:$0xff]  }
  0x3a   :  { %888 = vmatprep.subr.bf16.mxu1 %v1366_v0  ;;  %v1421_v0 = vld [vmem:[%s1957_s3 + $0x208] ss:$28 sps:$4 sm:$0xff]  }
  0x3b   :  { %928 = vmatpush1.bf16.msra.mxu0 %v1356_v61  ;;  %v1420_v61 = vld [vmem:[%s1957_s3 + $0x1d4] ss:$28 sps:$4 sm:$0xff]  }
  0x3c   :  { %929 = vmatprep.subr.bf16.mxu0 %v1364_v62  ;;  %v1418_v62 = vld [vmem:[%s1957_s3 + $0x1d0] ss:$28 sps:$4 sm:$0xff]  }
  0x3d   :  { %889 = vmatpush1.bf16.msra.mxu1 %v1371_v3  ;;  %v1429_v3 = vld [vmem:[%s1957_s3 + $0x27c] ss:$28 sps:$4 sm:$0xff]  }
  0x3e   :  { %890 = vmatprep.subr.bf16.mxu1 %v1372_v4  ;;  %v1427_v4 = vld [vmem:[%s1957_s3 + $0x278] ss:$28 sps:$4 sm:$0xff]  }
  0x3f   :  { %930 = vmatpush1.bf16.msra.mxu0 %v1362_v63  ;;  %v1423_v63 = vld [vmem:[%s1957_s3 + $0x20c] ss:$28 sps:$4 sm:$0xff]  }
  0x40   :  { %931 = vmatprep.subr.bf16.mxu0 %v1370_v1  ;;  %v1426_v1 = vld [vmem:[%s1957_s3 + $0x244] ss:$28 sps:$4 sm:$0xff]  }
  0x41   :  { %891 = vmatpush1.bf16.msra.mxu1 %v1377_v7  ;;  %v1435_v7 = vld [vmem:[%s1957_s3 + $0x2ec] ss:$28 sps:$4 sm:$0xff]  }
  0x42   :  { %946 = vmatprep.subr.bf16.mxu1 %v1380_v8  ;;  %v1433_v8 = vld [vmem:[%s1957_s3 + $0x2e8] ss:$28 sps:$4 sm:$0xff]  }
  0x43   :  { %932 = vmatpush1.bf16.msra.mxu0 %v1368_v2  ;;  %v1424_v2 = vld [vmem:[%s1957_s3 + $0x240] ss:$28 sps:$4 sm:$0xff]  }
  0x44   :  { %933 = vmatprep.subr.bf16.mxu0 %v1376_v5  ;;  %v1432_v5 = vld [vmem:[%s1957_s3 + $0x2b4] ss:$28 sps:$4 sm:$0xff]  }
  0x47   :  { %934 = vmatpush1.bf16.msra.mxu0 %v1374_v6  ;;  %v1430_v6 = vld [vmem:[%s1957_s3 + $0x2b0] ss:$28 sps:$4 sm:$0xff]  }
  0x48   :  { %1250 = vmatprep.subr.bf16.mxu0 %v1381_v9  ;;  %v1438_v9 = vld [vmem:[%s1957_s3 + $0x324] ss:$28 sps:$4 sm:$0xff]  }
  0xdd   :  { %v104_v17 = vpop.f32.mrb[0].mxu0 }
  0xde   :  { %v105_v18 = vadd.f32 %v104_v17, %v32_v15  ;;  %v106_v19 = vpop.f32.mrb[1].mxu0  ;;  %v1925_v17 = vld [vmem:[%s1958_s4] sm:$0x7f] }
  0xdf   :  { %v107_v20 = vadd.f32 %v106_v19, %v36_v16  ;;  %v108_v21 = vpop.f32.mrb[2].mxu0  ;;  %v252_v19 = vrot.slane %v1925_v17, %v31_v12 }
  0xe0   :  { %v109_v22 = vadd.f32 %v108_v21, %v32_v15  ;;  %v110_v23 = vpop.f32.mrb[3].mxu0  ;;  %v113_v25 = vmax.f32 %v105_v18, 0.0  ;;  %v1439_v15 = vld [vmem:[%s1957_s3 + $0x358] ss:$28 sps:$4 sm:$0xff]   ;;  %v263_v18 = vsub.s32 3, %v1766_v11  ;;  %v256_v21 = vrot.slane %v1925_v17, %v35_v14 }
  0xe1   :  { %v111_v24 = vadd.f32 %v110_v23, %v36_v16  ;;  %v114_v27 = vmax.f32 %v107_v20, 0.0  ;;  %v259_v16 = vsub.s32 2, %v1766_v11 }
  0xe2   :  { %v115_v26 = vmax.f32 %v109_v22, 0.0  ;;  %v264_v22 = vrot.slane %v1925_v17, %v263_v18 }
  0xe3   :  { %v116_v28 = vmax.f32 %v111_v24, 0.0  ;;  %v260_v20 = vrot.slane %v1925_v17, %v259_v16 }
  0xe4   :  { %v1777_v29 = vpack.c.bf16 %v115_v26, %v113_v25 }
  0xe5   :  { %v118_v30 = vpack.c.bf16 %v116_v28, %v114_v27 }
  0xe7   :  { %892 = vmatprep.mubr.bf16.mxu1 %v118_v30  ;;  %935 = vmatprep.mubr.bf16.mxu0 %v118_v30 }
  0xe8   :  { %893 = vmatmul.mubr.bf16.vlgmr.msra.gmra.mrb[0].mxu1 %v1777_v29  ;;  %936 = vmatmul.mubr.bf16.vlgmr.msra.gmra.mrb[4].mxu0 %v1777_v29 }
  0xe9   :  { %947 = vmatpush1.bf16.msra.mxu1 %v1378_v31  ;;  %1251 = vmatpush3.bf16.msra.mxu0 %v1382_v32 }
  0xea   :  { %978 = vmatprep.mubr.bf16.mxu1 %v118_v30  ;;  %1021 = vmatprep.mubr.bf16.mxu0 %v118_v30 }
  0xeb   :  { %948 = vmatprep.subr.bf16.mxu1 %v1385_v33  ;;  %1252 = vmatprep.subr.bf16.mxu0 %v1386_v34 }
  0xed   :  { %949 = vmatpush1.bf16.msra.mxu1 %v1383_v35  ;;  %1253 = vmatpush3.bf16.msra.mxu0 %v1387_v36 }
  0xee   :  { %950 = vmatprep.subr.bf16.mxu1 %v1390_v37  ;;  %1254 = vmatprep.subr.bf16.mxu0 %v1391_v38 }
  0xf1   :  { %951 = vmatpush1.bf16.msra.mxu1 %v1388_v39  ;;  %1255 = vmatpush3.bf16.msra.mxu0 %v1392_v40 }
  0xf2   :  { %952 = vmatprep.subr.bf16.mxu1 %v1395_v41  ;;  %1256 = vmatprep.subr.bf16.mxu0 %v1396_v42 }
  0xf5   :  { %953 = vmatpush1.bf16.msra.mxu1 %v1393_v43  ;;  %1257 = vmatpush3.bf16.msra.mxu0 %v1397_v44 }
  0xf6   :  { %954 = vmatprep.subr.bf16.mxu1 %v1400_v45  ;;  %1258 = vmatprep.subr.bf16.mxu0 %v1401_v46 }
  0xf9   :  { %955 = vmatpush1.bf16.msra.mxu1 %v1398_v47  ;;  %1259 = vmatpush3.bf16.msra.mxu0 %v1402_v48 }
  0xfa   :  { %956 = vmatprep.subr.bf16.mxu1 %v1405_v49  ;;  %1260 = vmatprep.subr.bf16.mxu0 %v1406_v50 }
  0xfd   :  { %957 = vmatpush1.bf16.msra.mxu1 %v1403_v51  ;;  %1261 = vmatpush3.bf16.msra.mxu0 %v1407_v52 }
  0xfe   :  { %958 = vmatprep.subr.bf16.mxu1 %v1410_v53  ;;  %1262 = vmatprep.subr.bf16.mxu0 %v1411_v54 }
 0x101   :  { %959 = vmatpush1.bf16.msra.mxu1 %v1408_v55  ;;  %1263 = vmatpush3.bf16.msra.mxu0 %v1412_v56 }
 0x102   :  { %960 = vmatprep.subr.bf16.mxu1 %v1415_v57  ;;  %1264 = vmatprep.subr.bf16.mxu0 %v1416_v58 }
 0x105   :  { %961 = vmatpush1.bf16.msra.mxu1 %v1413_v59  ;;  %1265 = vmatpush3.bf16.msra.mxu0 %v1417_v60 }
 0x106   :  { %962 = vmatprep.subr.bf16.mxu1 %v1420_v61 }
 0x108   :  { %1022 = vmatmul.mubr.bf16.vlgmr.msra.gmra.mrb[8].mxu0 %v1777_v29 }
 0x109   :  { %963 = vmatpush1.bf16.msra.mxu1 %v1418_v62 }
 0x10a   :  { %964 = vmatprep.subr.bf16.mxu1 %v1423_v63 }
 0x10d   :  { %965 = vmatpush1.bf16.msra.mxu1 %v1421_v0 }
 0x10e   :  { %966 = vmatprep.subr.bf16.mxu1 %v1426_v1 }
 0x111   :  { %967 = vmatpush1.bf16.msra.mxu1 %v1424_v2 }
 0x112   :  { %968 = vmatprep.subr.bf16.mxu1 %v1429_v3 }
 0x115   :  { %969 = vmatpush1.bf16.msra.mxu1 %v1427_v4 }
 0x116   :  { %970 = vmatprep.subr.bf16.mxu1 %v1432_v5  ;;  %v275_v5 = vsub.s32 6, %v1766_v11 }
 0x119   :  { %971 = vmatpush1.bf16.msra.mxu1 %v1430_v6 }
 0x11a   :  { %972 = vmatprep.subr.bf16.mxu1 %v1435_v7 }
 0x11d   :  { %973 = vmatpush1.bf16.msra.mxu1 %v1433_v8 }
 0x11e   :  { %974 = vmatprep.subr.bf16.mxu1 %v1438_v9 }
 0x121   :  { %975 = vmatpush1.bf16.msra.mxu1 %v1436_v10  ;;  %v276_v10 = vrot.slane %v1925_v17, %v275_v5 }
 0x122   :  { %976 = vmatprep.subr.bf16.mxu1 %v1441_v13 }
 0x125   :  { %977 = vmatpush1.bf16.msra.mxu1 %v1439_v15 }
 0x128   :  { %979 = vmatmul.mubr.bf16.vlgmr.msra.gmra.mrb[4].mxu1 %v1777_v29 }
 0x1bb   :  { %v894_v23 = vpop.f32.mrb[0].mxu1  ;;  %v937_v24 = vpop.f32.mrb[4].mxu0 }
 0x1bc   :  { %v895_v25 = vadd.f32 %v894_v23, %v252_v19  ;;  %v938_v26 = vadd.f32 %v937_v24, %v260_v20  ;;  %v896_v27 = vpop.f32.mrb[1].mxu1  ;;  %v939_v28 = vpop.f32.mrb[5].mxu0 }
 0x1bd   :  { %v897_v29 = vadd.f32 %v896_v27, %v256_v21  ;;  %v940_v30 = vadd.f32 %v939_v28, %v264_v22  ;;  %v898_v31 = vpop.f32.mrb[2].mxu1  ;;  %v941_v32 = vpop.f32.mrb[6].mxu0 }
 0x1be   :  { %v1030_v33 = vsub.f32 0.0, %v895_v25  ;;  %v1032_v12 = vsub.f32 0.0, %v938_v26  ;;  %v899_v34 = vadd.f32 %v898_v31, %v252_v19  ;;  %v942_v35 = vadd.f32 %v941_v32, %v260_v20  ;;  %v900_v36 = vpop.f32.mrb[3].mxu1  ;;  %v943_v37 = vpop.f32.mrb[7].mxu0 }
 0x1bf   :  { %v1031_v38 = vsub.f32 0.0, %v897_v29  ;;  %v1033_v14 = vsub.f32 0.0, %v940_v30  ;;  %v901_v39 = vadd.f32 %v900_v36, %v256_v21  ;;  %v944_v40 = vadd.f32 %v943_v37, %v264_v22 }
 0x1c0   :  { %v1044_v41 = vmul.f32 1.442695, %v1030_v33  ;;  %v1048_v42 = vmul.f32 1.442695, %v1032_v12  ;;  %v1037_v43 = vsub.f32 0.0, %v899_v34  ;;  %v1039_v44 = vsub.f32 0.0, %v942_v35 }
 0x1c1   :  { %v1046_v45 = vmul.f32 1.442695, %v1031_v38  ;;  %v1050_v46 = vmul.f32 1.442695, %v1033_v14  ;;  %v1038_v47 = vsub.f32 0.0, %v901_v39  ;;  %v1040_v48 = vsub.f32 0.0, %v944_v40 }
 0x1c2   :  { %1442 = vpow2.f32 %v1044_v41  ;;  %v1058_v49 = vmul.f32 1.442695, %v1037_v43  ;;  %v1062_v50 = vmul.f32 1.442695, %v1039_v44  ;;  %v267_v34 = vsub.s32 4, %v1766_v11 }
 0x1c3   :  { %1444 = vpow2.f32 %v1048_v42  ;;  %v1060_v51 = vmul.f32 1.442695, %v1038_v47  ;;  %v1064_v52 = vmul.f32 1.442695, %v1040_v48  ;;  %v271_v35 = vsub.s32 5, %v1766_v11 }
 0x1c4   :  { %1446 = vpow2.f32 %v1046_v45  ;;  %v268_v36 = vrot.slane %v1925_v17, %v267_v34 }
 0x1c5   :  { %1448 = vpow2.f32 %v1050_v46  ;;  %v272_v37 = vrot.slane %v1925_v17, %v271_v35 }
 0x1c6   :  { %1450 = vpow2.f32 %v1058_v49 }
 0x1c7   :  { %1452 = vpow2.f32 %v1062_v50 }
 0x1c8   :  { %1454 = vpow2.f32 %v1060_v51 }
 0x1c9   :  { %1456 = vpow2.f32 %v1064_v52 }
 0x1cc   :  { %v1443_v53 = vpop.eup %1442 }
 0x1cd   :  { %v1445_v54 = vpop.eup %1444  ;;  %v1072_v55 = vadd.f32 1.0, %v1443_v53 }
 0x1ce   :  { %v1447_v56 = vpop.eup %1446  ;;  %v1074_v57 = vadd.f32 1.0, %v1445_v54 }
 0x1cf   :  { %v1449_v58 = vpop.eup %1448  ;;  %1458 = vrcp.f32 %v1072_v55  ;;  %v1073_v59 = vadd.f32 1.0, %v1447_v56 }
 0x1d0   :  { %v1451_v60 = vpop.eup %1450  ;;  %1460 = vrcp.f32 %v1074_v57  ;;  %v1075_v61 = vadd.f32 1.0, %v1449_v58 }
 0x1d1   :  { %v1453_v62 = vpop.eup %1452  ;;  %1462 = vrcp.f32 %v1073_v59  ;;  %v1079_v63 = vadd.f32 1.0, %v1451_v60 }
 0x1d2   :  { %v1455_v0 = vpop.eup %1454  ;;  %1464 = vrcp.f32 %v1075_v61  ;;  %v1081_v1 = vadd.f32 1.0, %v1453_v62 }
 0x1d3   :  { %v1457_v2 = vpop.eup %1456  ;;  %1466 = vrcp.f32 %v1079_v63  ;;  %v1080_v3 = vadd.f32 1.0, %v1455_v0 }
 0x1d4   :  { %1468 = vrcp.f32 %v1081_v1  ;;  %v1082_v4 = vadd.f32 1.0, %v1457_v2 }
 0x1d5   :  { %1470 = vrcp.f32 %v1080_v3 }
 0x1d6   :  { %1472 = vrcp.f32 %v1082_v4 }
 0x1d9   :  { %v1459_v6 = vpop.eup %1458 }
 0x1da   :  { %v1461_v7 = vpop.eup %1460  ;;  %1100 = vst [vmem:[#allocation2] sm:$0xff] %v1459_v6 }
 0x1db   :  { %v1463_v8 = vpop.eup %1462  ;;  %1102 = vst [vmem:[#allocation2 + $0x10] sm:$0xff] %v1461_v7  ;;  %v1266_v9 = vpop.f32.mrb[8].mxu0 }
 0x1dc   :  { %v1465_v13 = vpop.eup %1464  ;;  %1101 = vst [vmem:[#allocation2 + $0x8] sm:$0xff] %v1463_v8  ;;  %v1267_v15 = vpop.f32.mrb[9].mxu0 }
 0x1dd   :  { %v1467_v16 = vpop.eup %1466  ;;  %1103 = vst [vmem:[#allocation2 + $0x18] sm:$0xff] %v1465_v13  ;;  %v1268_v18 = vadd.f32 %v1267_v15, %v1266_v9  ;;  %v1269_v19 = vpop.f32.mrb[10].mxu0 }
 0x1de   :  { %v1469_v20 = vpop.eup %1468  ;;  %1108 = vst [vmem:[#allocation2 + $0x38] sm:$0xff] %v1467_v16  ;;  %v1270_v21 = vpop.f32.mrb[11].mxu0 }
 0x1df   :  { %v1471_v22 = vpop.eup %1470  ;;  %1110 = vst [vmem:[#allocation2 + $0x48] sm:$0xff] %v1469_v20  ;;  %v1024_v23 = vadd.f32 %v1268_v18, %v276_v10  ;;  %v1271_v24 = vadd.f32 %v1270_v21, %v1269_v19 }
 0x1e0   :  { %v1473_v25 = vpop.eup %1472  ;;  %1109 = vst [vmem:[#allocation2 + $0x40] sm:$0xff] %v1471_v22 }
 0x1e1   :  { %1111 = vst [vmem:[#allocation2 + $0x50] sm:$0xff] %v1473_v25  ;;  %v1036_v26 = vsub.f32 0.0, %v1024_v23  ;;  %v1027_v27 = vadd.f32 %v1271_v24, %v276_v10 }
 0x1e3   :  { %v1056_v28 = vmul.f32 1.442695, %v1036_v26  ;;  %v1043_v29 = vsub.f32 0.0, %v1027_v27 }
 0x1e5   :  { %1474 = vpow2.f32 %v1056_v28  ;;  %v1070_v30 = vmul.f32 1.442695, %v1043_v29 }
 0x1e7   :  { %1476 = vpow2.f32 %v1070_v30 }
 0x1ef   :  { %v1475_v31 = vpop.eup %1474 }
 0x1f0   :  { %v1078_v32 = vadd.f32 1.0, %v1475_v31 }
 0x1f1   :  { %v1477_v33 = vpop.eup %1476 }
 0x1f2   :  { %1478 = vrcp.f32 %v1078_v32  ;;  %v1085_v12 = vadd.f32 1.0, %v1477_v33 }
 0x1f4   :  { %1480 = vrcp.f32 %v1085_v12 }
 0x1fb   :  { %v980_v38 = vpop.f32.mrb[4].mxu1 }
 0x1fc   :  { %v1479_v14 = vpop.eup %1478  ;;  %v981_v39 = vadd.f32 %v980_v38, %v268_v36  ;;  %v982_v40 = vpop.f32.mrb[5].mxu1 }
 0x1fd   :  { %1107 = vst.msk [vmem:[#allocation2 + $0x30] sm:$0xff] %vm1106_vm2, %v1479_v14  ;;  %v983_v41 = vadd.f32 %v982_v40, %v272_v37  ;;  %v984_v42 = vpop.f32.mrb[6].mxu1 }
 0x1fe   :  { %v1481_v43 = vpop.eup %1480  ;;  %v1034_v44 = vsub.f32 0.0, %v981_v39  ;;  %v985_v45 = vadd.f32 %v984_v42, %v268_v36  ;;  %v986_v46 = vpop.f32.mrb[7].mxu1 }
 0x1ff   :  { %1114 = vst.msk [vmem:[#allocation2 + $0x68] sm:$0xff] %vm1106_vm2, %v1481_v43  ;;  %v1035_v47 = vsub.f32 0.0, %v983_v41  ;;  %v987_v48 = vadd.f32 %v986_v46, %v272_v37 }
 0x200   :  { %v1052_v11 = vmul.f32 1.442695, %v1034_v44  ;;  %v1041_v49 = vsub.f32 0.0, %v985_v45 }
 0x201   :  { %v1054_v50 = vmul.f32 1.442695, %v1035_v47  ;;  %v1042_v51 = vsub.f32 0.0, %v987_v48 }
 0x202   :  { %1482 = vpow2.f32 %v1052_v11  ;;  %v1066_v17 = vmul.f32 1.442695, %v1041_v49 }
 0x203   :  { %1484 = vpow2.f32 %v1054_v50  ;;  %v1068_v52 = vmul.f32 1.442695, %v1042_v51 }
 0x204   :  { %1486 = vpow2.f32 %v1066_v17 }
 0x205   :  { %1488 = vpow2.f32 %v1068_v52 }
 0x20c   :  { %v1483_v53 = vpop.eup %1482 }
 0x20d   :  { %v1485_v54 = vpop.eup %1484  ;;  %v1076_v55 = vadd.f32 1.0, %v1483_v53 }
 0x20e   :  { %v1487_v56 = vpop.eup %1486  ;;  %v1077_v57 = vadd.f32 1.0, %v1485_v54 }
 0x20f   :  { %v1489_v58 = vpop.eup %1488  ;;  %1490 = vrcp.f32 %v1076_v55  ;;  %v1083_v59 = vadd.f32 1.0, %v1487_v56 }
 0x210   :  { %1492 = vrcp.f32 %v1077_v57  ;;  %v1084_v60 = vadd.f32 1.0, %v1489_v58 }
 0x211   :  { %1494 = vrcp.f32 %v1083_v59 }
 0x212   :  { %1496 = vrcp.f32 %v1084_v60 }
 0x219   :  { %v1491_v61 = vpop.eup %1490 }
 0x21a   :  { %v1493_v62 = vpop.eup %1492  ;;  %1104 = vst [vmem:[#allocation2 + $0x20] sm:$0xff] %v1491_v61 }
 0x21b   :  { %v1495_v63 = vpop.eup %1494  ;;  %1105 = vst [vmem:[#allocation2 + $0x28] sm:$0xff] %v1493_v62 }
 0x21c   :  { %v1497_v0 = vpop.eup %1496  ;;  %1112 = vst [vmem:[#allocation2 + $0x58] sm:$0xff] %v1495_v63 }
 0x21d   :  { %1113 = vst [vmem:[#allocation2 + $0x60] sm:$0xff] %v1497_v0 }
 0x21e   :  { %1119 = vsyncadd [#allocation3], 896  ;;  %s1523_s3 = smov [#allocation2]  }
 0x21f   :  { %s1120_s4 = sshll.u32 %s1523_s3, 4  ;;  %s1121_s4 = int_to_ptr.vmem [resolvable:$true] %s1120_s4 }
 0x220   :  { %s1498_s8 = scalar_lea.vmem %s1121_s4, 896  ;;  %s1502_s9 = scalar_lea.vmem %s1121_s4, 1792 }
 0x221   :  { %p1499_p0 = scmp.ne.s32.totalorder %s1121_s4, %s1498_s8  ;;  %p1503_p1 = scmp.lt.s32.totalorder %s1121_s4, %s1121_s4 }
 0x222   :  { %p1504_p2 = scmp.lt.s32.totalorder %s1502_s9, %s1498_s8 }
 0x224   :  { %p1505_p3 = por %p1504_p2, %p1503_p1 }
 0x226   :  { %p1506_p4 = pnand %p1505_p3, %p1499_p0 }
 0x228   :  { %1509 = shalt.err (!%p1506_p4)
}
 0x229   :  { %s1510_s11 = scalar_lea.hbm %s1959_s5, 896 }
 0x22a   :  { %p1511_p5 = scmp.ne.s32.totalorder %s1959_s5, %s1510_s11  ;;  %p1514_p6 = scmp.lt.u32.totalorder %s1510_s11, %s1959_s5 }
 0x22c   :  { %p1516_p7 = pnand %p1514_p6, %p1511_p5 }
 0x22e   :  { %1519 = shalt.err (!%p1516_p7)
}
 0x22f   :  { %s1524_s16 = smov 896   ;;  %s1525_s17 = smov 56  }
 0x230   :  { %1126 = dma.vmem_to_hbm [thread:$0]  %s1121_s4, 896, %s1959_s5, [#allocation3], %s1524_s16, %s1524_s16, %s1525_s17  }
 0x231   :  { %1520 = dma.done.wait [#allocation3], 1792  }
 0x232   :  { %1521 = vsyncadd [#allocation3], 4294965504 }
 0x233   :  { %1130 = vsyncpa [#allocation3], 1 }

</bundles_post_ra>
